<compile_context>
chip_gen: v7x
topology: tpu7x:2x2x1
jax: 0.10.0
libtpu: 0.0.40
codegen_flags: <defaults>
</compile_context>

<pallas_src>
from functools import partial

import jax
import jax.numpy as jnp
from jax.experimental import pallas as pl
from jax.experimental.pallas import tpu as pltpu


def _dce_kernel(cls_ref, feat_ref, proto_ref, y2_ref, out_ref, *, n_total):
    """One (episode, row-tile) grid cell: partial sum of -log p[target]."""
    x = feat_ref[...]                        # (tN, D)  f32 or bf16 features
    y = proto_ref[...]                       # (M,  D)  resident prototypes
    y2 = y2_ref[...]                         # (M,  1)  f32 ||y||^2 (precomputed)
    tn = x.shape[0]
    m_cls = y.shape[0]

    # Lane-dense (M, tN) logits: queries on lanes, the few classes on
    # sublanes.  log_softmax over classes is invariant to per-query
    # constants, so ||x||^2 is dropped:  logits = 2 * y @ x^T - ||y||^2.
    xy = jax.lax.dot_general(
        y, x, dimension_numbers=(((1,), (1,)), ((), ())),
        preferred_element_type=jnp.float32)                       # (M, tN) f32
    logits = 2.0 * xy - y2                                        # (M, tN) f32

    # log-sum-exp over the class (sublane) axis.
    mmax = jnp.max(logits, axis=0, keepdims=True)                 # (1, tN)
    lse = mmax + jnp.log(
        jnp.sum(jnp.exp(logits - mmax), axis=0, keepdims=True))   # (1, tN)

    # Select each query's target-class logit with a one-hot compare.
    cls = cls_ref[...]                                            # (1, tN) i32
    row_ids = jax.lax.broadcasted_iota(jnp.int32, (m_cls, tn), 0)
    sel = jnp.sum(jnp.where(row_ids == cls, logits, 0.0),
                  axis=0, keepdims=True)                          # (1, tN)

    # Partial last tile: padded columns may hold stale VMEM.  Correctness
    # relies on per-column independence of the softmax plus this mask
    # (jnp.where is a select, so NaN/Inf in padded columns cannot leak into
    # the sum).  DO NOT remove this mask.
    col = (pl.program_id(1) * tn
           + jax.lax.broadcasted_iota(jnp.int32, (1, tn), 1))
    contrib = jnp.where(col < n_total, lse - sel, 0.0)            # -log p[tgt]
    out_ref[...] = jnp.sum(contrib, axis=1, keepdims=True)        # (1, 1)


def _vmem_plan():
    """Per-generation VMEM plan: (per-buffer byte budget, vmem limit, min tiles)."""
    cap = 128 << 20
    try:
        cap = int(getattr(pltpu.get_tpu_info(), "vmem_capacity_bytes", cap) or cap)
    except Exception:
        pass
    if cap <= (64 << 20):
        # v7x-class: 64 MiB per TensorCore.  Keep 2x double-buffered feature
        # tile + resident prototypes well under the cap, and force >=2 tiles
        # so the second TensorCore (parallel grid axis) is not idle.
        return {"budget_bytes": 8 << 20, "vmem_limit": 48 << 20, "min_tiles": 2}
    # v5e / v6e: 128 MiB VMEM, single TensorCore -> just maximize tile size.
    return {"budget_bytes": 16 << 20, "vmem_limit": 64 << 20, "min_tiles": 1}


def _choose_tile_rows(n_rows, d, itemsize, *, budget_bytes, min_tiles=1):
    """Byte-budgeted row tile.  Lane-padding aware: a (rows, D) block costs
    rows * ceil(D/128)*128 * itemsize in VMEM.  Rounded to a multiple of 128
    (the lane-dense class-id block needs 128-lane alignment when tiling)."""
    per_row = max(1, pl.cdiv(d, 128) * 128 * itemsize)
    rows = (budget_bytes // per_row) // 128 * 128
    rows = max(128, int(rows))
    if min_tiles > 1:
        rows = min(rows, pl.cdiv(pl.cdiv(n_rows, min_tiles), 128) * 128)
    if rows >= n_rows:
        return int(n_rows)
    return int(rows)


def _dce_partials(cls_idx, features, prototypes, y2, *, tile_rows, vmem_limit):
    """pallas_call over grid (episodes, row tiles); returns per-tile sums."""
    e, n, d = features.shape
    m = prototypes.shape[1]
    tn = int(tile_rows)
    num_tiles = pl.cdiv(n, tn)
    return pl.pallas_call(
        partial(_dce_kernel, n_total=n),
        out_shape=jax.ShapeDtypeStruct((e, num_tiles, 1), jnp.float32),
        grid=(e, num_tiles),
        in_specs=[
            # class ids, lane-dense (1, tn) slice per tile
            pl.BlockSpec((None, 1, tn), lambda b, i: (b, 0, i)),
            # streamed feature tile (double-buffered by Pallas)
            pl.BlockSpec((None, tn, d), lambda b, i: (b, i, 0)),
            # prototypes, resident per episode
            pl.BlockSpec((None, m, d), lambda b, i: (b, 0, 0)),
            # precomputed ||y||^2, resident per episode
            pl.BlockSpec((None, m, 1), lambda b, i: (b, 0, 0)),
        ],
        out_specs=pl.BlockSpec((None, 1, 1), lambda b, i: (b, i, 0)),
        compiler_params=pltpu.CompilerParams(
            dimension_semantics=("parallel", "parallel"),
            vmem_limit_bytes=int(vmem_limit)),
    )(cls_idx, features, prototypes, y2)


def dce_loss_batched(features, class_indices, prototypes, *, tile_rows=None):
    """Batched episodes in one pallas_call.

    features:       (E, N, D)  f32 or bf16
    class_indices:  (E, N)     int, prototype-row ids in [0, M)
    prototypes:     (E, M, D)  f32 or bf16
    Returns per-episode losses, shape (E,) f32.
    """
    if features.ndim != 3 or prototypes.ndim != 3 or class_indices.ndim != 2:
        raise ValueError("expected features (E,N,D), class_indices (E,N), "
                         "prototypes (E,M,D)")
    e, n, d = features.shape
    if prototypes.shape[0] != e or prototypes.shape[2] != d:
        raise ValueError("feature / prototype dims differ")
    if class_indices.shape != (e, n):
        raise ValueError("class_indices shape mismatch")

    plan = _vmem_plan()
    if tile_rows is None:
        tn = _choose_tile_rows(n, d, features.dtype.itemsize,
                               budget_bytes=plan["budget_bytes"],
                               min_tiles=plan["min_tiles"])
    else:
        tn = int(min(int(tile_rows), n))
    if tn < n and tn % 128 != 0:
        # The lane-dense (1, tn) class-id block needs 128-lane alignment.
        raise ValueError("tile_rows must be a multiple of 128 when tiling")

    cls3 = class_indices.astype(jnp.int32).reshape(e, 1, n)
    # Hoisted out of the kernel (identical every grid step): ||y||^2 in f32.
    y2 = jnp.sum(prototypes.astype(jnp.float32) ** 2, axis=2, keepdims=True)

    partials = _dce_partials(cls3, features, prototypes, y2,
                             tile_rows=tn, vmem_limit=plan["vmem_limit"])
    return jnp.sum(partials, axis=(1, 2)) / jnp.float32(n)


def dce_loss(features, labels, prototypes, n_query, n_classes, *,
             tile_rows=None, class_indices=None, labels_are_canonical=False):
    """Matches DCELoss.forward: mean over rows of -log softmax(-dist)[target].

    Fast paths (skip the device-side unique + searchsorted):
      * class_indices: precomputed prototype-row id per feature row, or
      * labels_are_canonical=True: labels already take values 0..n_classes-1.
    """
    n, d = features.shape
    m, d2 = prototypes.shape
    if d != d2:
        raise ValueError("feature / prototype dims differ")
    assert m == n_classes and n == n_classes * n_query

    if class_indices is not None:
        cls_idx = class_indices.astype(jnp.int32)
    elif labels_are_canonical:
        cls_idx = labels.astype(jnp.int32)
    else:
        # Prototype row j corresponds to the j-th smallest distinct label
        # value present in the episode (same convention as torch.unique in
        # the reference).  NOTE: jnp.unique(..., size=) pads when fewer than
        # n_classes distinct labels appear, which would silently misroute
        # targets -- the episode must contain exactly n_classes distinct
        # labels (guaranteed here by n == n_classes * n_query per class).
        uniq = jnp.unique(labels, size=n_classes)
        cls_idx = jnp.searchsorted(uniq, labels).astype(jnp.int32)

    losses = dce_loss_batched(features[None], cls_idx[None], prototypes[None],
                              tile_rows=tile_rows)
    return losses[0]


def _reference(features, labels, prototypes, n_query, n_classes):
    """Pure-JAX reference mirroring the PyTorch module (sort + gather)."""
    order = jnp.argsort(labels)                  # stable
    x = features[order].astype(jnp.float32)
    y = prototypes.astype(jnp.float32)
    d = jnp.sum((x[:, None, :] - y[None, :, :]) ** 2, axis=2)      # (N, M)
    log_p = jax.nn.log_softmax(-d, axis=1).reshape(n_classes, n_query, -1)
    tgt = jnp.arange(n_classes)[:, None, None]
    gathered = jnp.take_along_axis(
        log_p, jnp.broadcast_to(tgt, (n_classes, n_query, 1)), axis=2)
    return -jnp.mean(gathered)


if __name__ == "__main__":
    key = jax.random.PRNGKey(0)
    k1, k2, k3, k4 = jax.random.split(key, 4)

    # Case 1: small single-tile episode, non-canonical label values
    # (exercises the unique + searchsorted mapping path).
    n_classes, n_query, d = 4, 8, 32
    n = n_classes * n_query
    ka, kb, kc = jax.random.split(k1, 3)
    feats = jax.random.normal(ka, (n, d), jnp.float32)
    protos = jax.random.normal(kb, (n_classes, d), jnp.float32)
    label_vals = jnp.array([2, 5, 7, 11], jnp.int32)
    labels = jnp.repeat(label_vals, n_query)[jax.random.permutation(kc, n)]
    loss = jax.block_until_ready(dce_loss(feats, labels, protos,
                                          n_query, n_classes))
    ref = _reference(feats, labels, protos, n_query, n_classes)
    assert jnp.allclose(loss, ref, rtol=1e-4, atol=1e-4), (loss, ref)

    # Case 2: multi-tile streaming + canonical-label fast path (masked last tile).
    n_classes, n_query, d = 4, 75, 32
    n = n_classes * n_query
    ka, kb, kc = jax.random.split(k2, 3)
    feats = jax.random.normal(ka, (n, d), jnp.float32)
    protos = jax.random.normal(kb, (n_classes, d), jnp.float32)
    labels = jnp.repeat(jnp.arange(n_classes, dtype=jnp.int32), n_query)
    labels = labels[jax.random.permutation(kc, n)]
    loss = jax.block_until_ready(
        dce_loss(feats, labels, protos, n_query, n_classes,
                 tile_rows=128, labels_are_canonical=True))
    ref = _reference(feats, labels, protos, n_query, n_classes)
    assert jnp.allclose(loss, ref, rtol=1e-4, atol=1e-4), (loss, ref)

    # Case 3: bf16 streaming (halves HBM bytes; f32 MXU accumulation in-kernel).
    n_classes, n_query, d = 5, 15, 64
    n = n_classes * n_query
    ka, kb = jax.random.split(k3)
    feats = jax.random.normal(ka, (n, d), jnp.float32).astype(jnp.bfloat16)
    protos = jax.random.normal(kb, (n_classes, d), jnp.float32).astype(jnp.bfloat16)
    labels = jnp.repeat(jnp.arange(n_classes, dtype=jnp.int32), n_query)
    loss = jax.block_until_ready(dce_loss(feats, labels, protos,
                                          n_query, n_classes))
    ref = _reference(feats, labels, protos, n_query, n_classes)
    assert jnp.allclose(loss, ref, rtol=1e-2, atol=1e-2), (loss, ref)

    # Case 4: batched episodes (leading grid axis), tiled rows per episode.
    E, n_classes, n_query, d = 3, 5, 30, 32
    n = n_classes * n_query
    ka, kb = jax.random.split(k4)
    feats = jax.random.normal(ka, (E, n, d), jnp.float32)
    protos = jax.random.normal(kb, (E, n_classes, d), jnp.float32)
    cls_idx = jnp.broadcast_to(
        jnp.repeat(jnp.arange(n_classes, dtype=jnp.int32), n_query)[None],
        (E, n))
    losses = jax.block_until_ready(
        dce_loss_batched(feats, cls_idx, protos, tile_rows=128))
    for ep in range(E):
        ref = _reference(feats[ep], cls_idx[ep], protos[ep], n_query, n_classes)
        assert jnp.allclose(losses[ep], ref, rtol=1e-4, atol=1e-4), (ep, losses[ep], ref)

    print("KERNEL_OK")
</pallas_src>

<mosaic_0001>
module attributes {stable_mosaic.version = 11 : i64} {
  func.func @_dce_kernel(%arg0: i32, %arg1: i32, %arg2: memref<1x1x32xi32, #tpu.memory_space<vmem>>, %arg3: memref<1x32x32xf32, #tpu.memory_space<vmem>>, %arg4: memref<1x4x32xf32, #tpu.memory_space<vmem>>, %arg5: memref<1x4x1xf32, #tpu.memory_space<vmem>>, %arg6: memref<1x1x1xf32, #tpu.memory_space<vmem>>) attributes {dimension_semantics = [#tpu.dimension_semantics<parallel>, #tpu.dimension_semantics<parallel>], iteration_bounds = array<i64: 1, 1>, scalar_prefetch = 0 : i64, scratch_operands = 0 : i64, tpu.core_type = #tpu.core_type<tc>, window_params = [{transform_indices = @transform_0, window_bounds = array<i64: 1, 1, 32>}, {transform_indices = @transform_1, window_bounds = array<i64: 1, 32, 32>}, {transform_indices = @transform_2, window_bounds = array<i64: 1, 4, 32>}, {transform_indices = @transform_3, window_bounds = array<i64: 1, 4, 1>}, {transform_indices = @transform_4, window_bounds = array<i64: 1, 1, 1>}]} {
    %c0 = arith.constant 0 : index
    %c0_0 = arith.constant 0 : index
    %c0_1 = arith.constant 0 : index
    %0 = vector.load %arg3[%c0, %c0_0, %c0_1] : memref<1x32x32xf32, #tpu.memory_space<vmem>>, vector<1x32x32xf32>
    %1 = vector.shape_cast %0 : vector<1x32x32xf32> to vector<32x32xf32>
    %c0_2 = arith.constant 0 : index
    %c0_3 = arith.constant 0 : index
    %c0_4 = arith.constant 0 : index
    %2 = vector.load %arg4[%c0_2, %c0_3, %c0_4] : memref<1x4x32xf32, #tpu.memory_space<vmem>>, vector<1x4x32xf32>
    %3 = vector.shape_cast %2 : vector<1x4x32xf32> to vector<4x32xf32>
    %c0_5 = arith.constant 0 : index
    %c0_6 = arith.constant 0 : index
    %c0_7 = arith.constant 0 : index
    %4 = vector.load %arg5[%c0_5, %c0_6, %c0_7] : memref<1x4x1xf32, #tpu.memory_space<vmem>>, vector<1x4x1xf32>
    %5 = vector.shape_cast %4 : vector<1x4x1xf32> to vector<4x1xf32>
    %cst = arith.constant dense<0.000000e+00> : vector<4x32xf32>
    %6 = tpu.matmul %3, %1, %cst {dimension_numbers = #tpu.dot_dimension_numbers<[1], [1], [0], [0], [0, 0, 1, 0], [], []>} : vector<4x32xf32>, vector<32x32xf32>, vector<4x32xf32> -> vector<4x32xf32>
    %cst_8 = arith.constant 2.000000e+00 : f32
    %7 = vector.broadcast %cst_8 : f32 to vector<4x32xf32>
    %8 = arith.mulf %7, %6 : vector<4x32xf32>
    %9 = vector.broadcast %5 : vector<4x1xf32> to vector<4x32xf32>
    %10 = arith.subf %8, %9 : vector<4x32xf32>
    %cst_9 = arith.constant dense<0xFF800000> : vector<32xf32>
    %11 = vector.multi_reduction <maximumf>, %10, %cst_9 [0] : vector<4x32xf32> to vector<32xf32>
    %12 = vector.shape_cast %11 : vector<32xf32> to vector<1x32xf32>
    %13 = vector.broadcast %12 : vector<1x32xf32> to vector<4x32xf32>
    %14 = arith.subf %10, %13 : vector<4x32xf32>
    %15 = math.exp %14 : vector<4x32xf32>
    %cst_10 = arith.constant dense<0.000000e+00> : vector<32xf32>
    %16 = vector.multi_reduction <add>, %15, %cst_10 [0] : vector<4x32xf32> to vector<32xf32>
    %17 = vector.shape_cast %16 : vector<32xf32> to vector<1x32xf32>
    %18 = math.log %17 : vector<1x32xf32>
    %19 = arith.addf %12, %18 : vector<1x32xf32>
    %c0_11 = arith.constant 0 : index
    %c0_12 = arith.constant 0 : index
    %c0_13 = arith.constant 0 : index
    %20 = vector.load %arg2[%c0_11, %c0_12, %c0_13] : memref<1x1x32xi32, #tpu.memory_space<vmem>>, vector<1x1x32xi32>
    %21 = vector.shape_cast %20 : vector<1x1x32xi32> to vector<1x32xi32>
    %22 = tpu.iota {dimensions = array<i32: 0>} : vector<4x32xi32>
    %23 = vector.broadcast %21 : vector<1x32xi32> to vector<4x32xi32>
    %24 = arith.cmpi eq, %22, %23 : vector<4x32xi32>
    %cst_14 = arith.constant 0.000000e+00 : f32
    %25 = vector.broadcast %cst_14 : f32 to vector<4x32xf32>
    %26 = arith.select %24, %10, %25 : vector<4x32xi1>, vector<4x32xf32>
    %cst_15 = arith.constant dense<0.000000e+00> : vector<32xf32>
    %27 = vector.multi_reduction <add>, %26, %cst_15 [0] : vector<4x32xf32> to vector<32xf32>
    %28 = vector.shape_cast %27 : vector<32xf32> to vector<1x32xf32>
    %c32_i32 = arith.constant 32 : i32
    %29 = arith.muli %arg1, %c32_i32 : i32
    %30 = tpu.iota {dimensions = array<i32: 1>} : vector<1x32xi32>
    %31 = vector.broadcast %29 : i32 to vector<1x32xi32>
    %32 = arith.addi %31, %30 : vector<1x32xi32>
    %c32_i32_16 = arith.constant 32 : i32
    %33 = vector.broadcast %c32_i32_16 : i32 to vector<1x32xi32>
    %34 = arith.cmpi slt, %32, %33 : vector<1x32xi32>
    %35 = arith.subf %19, %28 : vector<1x32xf32>
    %cst_17 = arith.constant 0.000000e+00 : f32
    %36 = vector.broadcast %cst_17 : f32 to vector<1x32xf32>
    %37 = arith.select %34, %35, %36 : vector<1x32xi1>, vector<1x32xf32>
    %cst_18 = arith.constant dense<0.000000e+00> : vector<1xf32>
    %38 = vector.multi_reduction <add>, %37, %cst_18 [1] : vector<1x32xf32> to vector<1xf32>
    %39 = vector.shape_cast %38 : vector<1xf32> to vector<1x1xf32>
    %c0_19 = arith.constant 0 : index
    %c0_20 = arith.constant 0 : index
    %c0_21 = arith.constant 0 : index
    %40 = vector.load %arg6[%c0_19, %c0_20, %c0_21] : memref<1x1x1xf32, #tpu.memory_space<vmem>>, vector<1x1x1xf32>
    %41 = vector.shape_cast %40 : vector<1x1x1xf32> to vector<1x1xf32>
    %42 = vector.shape_cast %39 : vector<1x1xf32> to vector<1x1x1xf32>
    tpu.vector_store %arg6[%c0_19, %c0_20, %c0_21], %42 {strides = array<i32>} : memref<1x1x1xf32, #tpu.memory_space<vmem>>, vector<1x1x1xf32>,
    return
  }
  func.func @transform_0(%arg0: i32, %arg1: i32) -> (i32, i32, i32) {
    %c0_i32 = arith.constant 0 : i32
    %c0_i32_0 = arith.constant 0 : i32
    return %arg0, %c0_i32, %arg1 : i32, i32, i32
  }
  func.func @transform_1(%arg0: i32, %arg1: i32) -> (i32, i32, i32) {
    %c0_i32 = arith.constant 0 : i32
    %c0_i32_0 = arith.constant 0 : i32
    return %arg0, %arg1, %c0_i32 : i32, i32, i32
  }
  func.func @transform_2(%arg0: i32, %arg1: i32) -> (i32, i32, i32) {
    %c0_i32 = arith.constant 0 : i32
    %c0_i32_0 = arith.constant 0 : i32
    %c0_i32_1 = arith.constant 0 : i32
    return %arg0, %c0_i32, %c0_i32_0 : i32, i32, i32
  }
  func.func @transform_3(%arg0: i32, %arg1: i32) -> (i32, i32, i32) {
    %c0_i32 = arith.constant 0 : i32
    %c0_i32_0 = arith.constant 0 : i32
    %c0_i32_1 = arith.constant 0 : i32
    return %arg0, %c0_i32, %c0_i32_0 : i32, i32, i32
  }
  func.func @transform_4(%arg0: i32, %arg1: i32) -> (i32, i32, i32) {
    %c0_i32 = arith.constant 0 : i32
    %c0_i32_0 = arith.constant 0 : i32
    return %arg0, %arg1, %c0_i32 : i32, i32, i32
  }
}

</mosaic_0001>

<bundles_post_ra>
// kernel: tpu_custom_call.1
= control target key start
LH: loop header
LB: loop body
LE: loop exit
PB: predicated region body
PF: predicated region fallthrough
CT: control target
= control target key end

     0   :  { %9 = vsyncpa [#allocation3], 0  ;;  %s500_s0 = inlined_call_operand.hbm [shape: s32[1,1,32], index: 0, kind: input, shape index: {}]   ;;  %s501_s1 = inlined_call_operand.hbm [shape: f32[1,32,32], index: 1, kind: input, shape index: {}]   ;;  %s502_s2 = inlined_call_operand.hbm [shape: f32[1,4,32], index: 2, kind: input, shape index: {}]   ;;  %s503_s3 = inlined_call_operand.hbm [shape: f32[1,4,1], index: 3, kind: input, shape index: {}]   ;;  %s504_s4 = inlined_call_operand.hbm [shape: f32[1,1,1], index: 4, kind: output, shape index: {}]  }
   0x1   :  { %10 = vsyncpa [#allocation6], 0 }
   0x2   :  { %11 = vsyncpa [#allocation9], 0 }
   0x3   :  { %12 = vsyncpa [#allocation4], 0  ;;  %s397_s15 = smov [#allocation5]   ;;  %s279_s19 = scalar_lea.hbm %s501_s1, 512 }
   0x4   :  { %s28_s16 = sshll.u32 %s397_s15, 4  ;;  %p280_p0 = scmp.ne.s32.totalorder %s501_s1, %s279_s19  ;;  %s29_s16 = int_to_ptr.vmem [resolvable:$true] %s28_s16 }
   0x5   :  { %p283_p1 = scmp.lt.u32.totalorder %s279_s19, %s501_s1 }
   0x7   :  { %p285_p2 = pnand %p283_p1, %p280_p0 }
   0x9   :  { %288 = shalt.err (!%p285_p2)
}
   0xa   :  { %s289_s24 = scalar_lea.vmem %s29_s16, 512  ;;  %p294_p4 = scmp.lt.s32.totalorder %s29_s16, %s29_s16 }
   0xb   :  { %p290_p3 = scmp.ne.s32.totalorder %s29_s16, %s289_s24  ;;  %p295_p5 = scmp.lt.s32.totalorder %s289_s24, %s289_s24 }
   0xd   :  { %p296_p6 = por %p295_p5, %p294_p4 }
   0xf   :  { %p297_p7 = pnand %p296_p6, %p290_p3 }
  0x11   :  { %300 = shalt.err (!%p297_p7)
}
  0x12   :  { %s398_s25 = smov 128   ;;  %s399_s26 = smov 8  }
  0x13   :  { %34 = dma.hbm_to_vmem [thread:$0]  %s501_s1, 512, %s29_s16, [#allocation6], %s398_s25, %s398_s25, %s399_s26  }
  0x14   :  { %s400_s29 = smov [#allocation2]   ;;  %s401_s5 = smov [#allocation7]  }
  0x15   :  { %s19_s30 = sshll.u32 %s400_s29, 4  ;;  %s41_s6 = sshll.u32 %s401_s5, 4  ;;  %s20_s30 = int_to_ptr.vmem [resolvable:$true] %s19_s30  ;;  %s42_s6 = int_to_ptr.vmem [resolvable:$true] %s41_s6 }
  0x16   :  { %s301_s9 = scalar_lea.hbm %s500_s0, 16 }
  0x17   :  { %p302_p8 = scmp.ne.s32.totalorder %s500_s0, %s301_s9  ;;  %p305_p9 = scmp.lt.u32.totalorder %s301_s9, %s500_s0 }
  0x19   :  { %p307_p10 = pnand %p305_p9, %p302_p8 }
  0x1b   :  { %310 = shalt.err (!%p307_p10)
}
  0x1c   :  { %s311_s1 = scalar_lea.vmem %s20_s30, 16  ;;  %s315_s14 = scalar_lea.vmem %s20_s30, 32 }
  0x1d   :  { %p312_p11 = scmp.ne.s32.totalorder %s20_s30, %s311_s1  ;;  %p316_p12 = scmp.lt.s32.totalorder %s20_s30, %s20_s30 }
  0x1e   :  { %p317_p13 = scmp.lt.s32.totalorder %s315_s14, %s311_s1 }
  0x20   :  { %p318_p0 = por %p317_p13, %p316_p12 }
  0x22   :  { %p319_p1 = pnand %p318_p0, %p312_p11 }
  0x24   :  { %322 = shalt.err (!%p319_p1)
}
  0x25   :  { %22 = dma.hbm_to_vmem [thread:$0]  %s500_s0, 16, %s20_s30, [#allocation3]  }
  0x26   :  { %s323_s19 = scalar_lea.hbm %s502_s2, 64 }
  0x27   :  { %p324_p2 = scmp.ne.s32.totalorder %s502_s2, %s323_s19  ;;  %p327_p3 = scmp.lt.u32.totalorder %s323_s19, %s502_s2 }
  0x29   :  { %p329_p4 = pnand %p327_p3, %p324_p2 }
  0x2b   :  { %332 = shalt.err (!%p329_p4)
}
  0x2c   :  { %s333_s24 = scalar_lea.vmem %s42_s6, 64  ;;  %p338_p6 = scmp.lt.s32.totalorder %s42_s6, %s42_s6 }
  0x2d   :  { %p334_p5 = scmp.ne.s32.totalorder %s42_s6, %s333_s24  ;;  %p339_p7 = scmp.lt.s32.totalorder %s333_s24, %s333_s24 }
  0x2f   :  { %p340_p8 = por %p339_p7, %p338_p6 }
  0x31   :  { %p341_p9 = pnand %p340_p8, %p334_p5 }
  0x33   :  { %344 = shalt.err (!%p341_p9)
}
  0x34   :  { %44 = dma.hbm_to_vmem [thread:$0]  %s502_s2, 64, %s42_s6, [#allocation6]  }
  0x35   :  { %s402_s26 = smov [#allocation8]   ;;  %s345_s30 = scalar_lea.hbm %s503_s3, 64 }
  0x36   :  { %s51_s27 = sshll.u32 %s402_s26, 4  ;;  %p346_p10 = scmp.ne.s32.totalorder %s503_s3, %s345_s30  ;;  %s52_s27 = int_to_ptr.vmem [resolvable:$true] %s51_s27 }
  0x37   :  { %p349_p11 = scmp.lt.u32.totalorder %s345_s30, %s503_s3 }
  0x39   :  { %p351_p12 = pnand %p349_p11, %p346_p10 }
  0x3b   :  { %354 = shalt.err (!%p351_p12)
}
  0x3c   :  { %s355_s10 = scalar_lea.vmem %s52_s27, 64  ;;  %p360_p0 = scmp.lt.s32.totalorder %s52_s27, %s52_s27 }
  0x3d   :  { %p356_p13 = scmp.ne.s32.totalorder %s52_s27, %s355_s10  ;;  %p361_p1 = scmp.lt.s32.totalorder %s355_s10, %s355_s10 }
  0x3f   :  { %p362_p2 = por %p361_p1, %p360_p0 }
  0x41   :  { %p363_p3 = pnand %p362_p2, %p356_p13 }
  0x43   :  { %366 = shalt.err (!%p363_p3)
}
  0x44   :  { %54 = dma.hbm_to_vmem [thread:$0]  %s503_s3, 64, %s52_s27, [#allocation9]  }
  0x45   :  { %389 = dma.done.wait [#allocation3], 16  }
  0x46   :  { %390 = vsyncadd [#allocation3], 4294967280 }
  0x47   :  { %391 = dma.done.wait [#allocation6], 576  }
  0x48   :  { %392 = vsyncadd [#allocation6], 4294966720 }
  0x49   :  { %393 = dma.done.wait [#allocation9], 64  }
  0x4a   :  { %394 = vsyncadd [#allocation9], 4294967232  ;;  %v403_v0 = vmov 0.0|0.0   ;;  %vm404_vm0 = vmmov 0   ;;  %v405_v1 = vmov 0.0   ;;  %v406_v2 = vmov 0  }
  0x4b   :  { %255 = vmatprep.subr.bf16.mxu0 %v403_v0  ;;  %252 = vmatprep.mubr.msk.f32.mxu0 %vm404_vm0, %v405_v1  ;;  %vm73_vm1 = vcmask 261120   ;;  %v67_v3 = vld [vmem:[#allocation5] sm:$0xff]  ;;  %v68_v4 = vld [vmem:[#allocation5 + $0x8] sm:$0xff]  ;;  %v69_v7 = vld [vmem:[#allocation5 + $0x10] sm:$0xff]  ;;  %vm166_vm3 = vcmask 257024   ;;  %v188_v25 = vlaneseq  ;;  %s407_s3 = smov [#allocation10]  }
  0x4c   :  { %274 = vset.pattern.permute.xlu0 %v406_v2  ;;  %vm257_vm2 = vmpackc.low %vm73_vm1, %vm73_vm1  ;;  %v256_v5 = vpack.c.bf16 %v68_v4, %v67_v3  ;;  %v72_v6 = vld [vmem:[#allocation8] sm:$0xf]  ;;  %v70_v8 = vld [vmem:[#allocation5 + $0x18] sm:$0xff]  ;;  %s222_s11 = sshll.u32 %s407_s3, 4  ;;  %vm214_vm6 = vcmask 0   ;;  %s223_s11 = int_to_ptr.vmem [resolvable:$true] %s222_s11 }
  0x4d   :  { %162 = vperm.xlu0 %274, %v72_v6   ;;  %v260_v9 = vpack.c.bf16 %v70_v8, %v69_v7  ;;  %v71_v10 = vld [vmem:[#allocation7] sm:$0xf]  ;;  %v189_v26 = vshrl.u32 %v188_v25, 7  ;;  %v238_v27 = vld [vmem:[#allocation2] ss:$0 sm:$0xff]  ;;  %v205_v44 = vand.u32 127, %v188_v25  ;;  %p372_p5 = scmp.lt.s32.totalorder %s223_s11, %s223_s11 }
  0x4e   :  { %258 = vmatpush3.bf16.xpose.msk.msra.mxu0 %vm257_vm2, %v256_v5  ;;  %s367_s12 = scalar_lea.vmem %s223_s11, 16  ;;  %s371_s13 = scalar_lea.vmem %s223_s11, 32 }
  0x4f   :  { %259 = vmatprep.subr.bf16.mxu0 %v403_v0  ;;  %vm194_vm4 = vcmp.eq.s32.totalorder %v189_v26, %v238_v27  ;;  %vm208_vm5 = vcmp.lt.s32.totalorder %v205_v44, 32  ;;  %p368_p4 = scmp.ne.s32.totalorder %s223_s11, %s367_s12  ;;  %p373_p6 = scmp.lt.s32.totalorder %s371_s13, %s367_s12 }
  0x51   :  { %p374_p7 = por %p373_p6, %p372_p5 }
  0x53   :  { %p375_p8 = pnand %p374_p7, %p368_p4 }
  0x56   :  { %262 = vmatpush3.bf16.xpose.msk.msra.mxu0 %vm257_vm2, %v260_v9 }
  0x5d   :  { %253 = vmatmul.mubr.msk.f32.vlgmr.msra.gmra.mrb[0].mxu0 %vm73_vm1, %v71_v10 }
  0xcc   :  { %v163_v12 = vpop.permute.xlu0 %162 }
 0x130   :  { %v155_v11 = vpop.f32.mrb[0].mxu0 }
 0x131   :  { %v159_v13 = vmul.f32 2.0, %v155_v11  ;;  %v254_v14 = vpop.f32.mrb[1].mxu0 }
 0x133   :  { %v165_v15 = vsub.f32 %v159_v13, %v163_v12 }
 0x135   :  { %v167_v16 = vsel %vm166_vm3, %v165_v15, -inf  ;;  %v195_v30 = vsel %vm194_vm4, %v165_v15, 0.0 }
 0x136   :  { %v168_v17 = vrot.slane %v167_v16, 4  ;;  %v196_v33 = vsel %vm166_vm3, %v195_v30, 0.0 }
 0x137   :  { %v197_v35 = vrot.slane %v196_v33, 4 }
 0x138   :  { %v169_v18 = vmax.f32 %v167_v16, %v168_v17 }
 0x139   :  { %v198_v38 = vadd.f32 %v197_v35, %v196_v33 }
 0x13a   :  { %v170_v19 = vrot.slane %v169_v18, 2 }
 0x13b   :  { %v199_v40 = vrot.slane %v198_v38, 2 }
 0x13c   :  { %v171_v20 = vmax.f32 %v169_v18, %v170_v19 }
 0x13d   :  { %v200_v41 = vadd.f32 %v199_v40, %v198_v38 }
 0x13e   :  { %v172_v21 = vrot.slane %v171_v20, 1 }
 0x13f   :  { %v201_v42 = vrot.slane %v200_v41, 1 }
 0x140   :  { %v173_v22 = vmax.f32 %v171_v20, %v172_v21 }
 0x141   :  { %v202_v47 = vadd.f32 %v201_v42, %v200_v41 }
 0x142   :  { %v174_v23 = vsub.f32 %v165_v15, %v173_v22 }
 0x144   :  { %v175_v24 = vmul.f32 1.442695, %v174_v23 }
 0x146   :  { %275 = vpow2.f32 %v175_v24 }
 0x150   :  { %v276_v28 = vpop.eup %275 }
 0x151   :  { %v177_v29 = vsel %vm166_vm3, %v276_v28, 0.0 }
 0x152   :  { %v178_v31 = vrot.slane %v177_v29, 4 }
 0x154   :  { %v179_v32 = vadd.f32 %v178_v31, %v177_v29 }
 0x156   :  { %v180_v34 = vrot.slane %v179_v32, 2 }
 0x158   :  { %v181_v36 = vadd.f32 %v180_v34, %v179_v32 }
 0x15a   :  { %v182_v37 = vrot.slane %v181_v36, 1 }
 0x15c   :  { %v183_v39 = vadd.f32 %v182_v37, %v181_v36 }
 0x15e   :  { %277 = vlog2.f32 %v183_v39 }
 0x168   :  { %v278_v43 = vpop.eup %277 }
 0x169   :  { %v185_v45 = vmul.f32 0.6931472, %v278_v43 }
 0x16b   :  { %v186_v46 = vadd.f32 %v185_v45, %v173_v22 }
 0x16d   :  { %v209_v48 = vsub.f32 %v186_v46, %v202_v47 }
 0x16f   :  { %v210_v49 = vsel %vm208_vm5, %v209_v48, 0.0 }
 0x170   :  { %v211_v50 = vsel %vm73_vm1, %v210_v49, 0.0 }
 0x171   :  { %212 = vadd.xlane.f32.xlu0 %v211_v50 }
 0x1fe   :  { %v213_v51 = vpop.xlane.xlu0 %212 }
 0x1ff   :  { %215 = vst.msk [vmem:[#allocation10] sm:$0x1] %vm214_vm6, %v213_v51 }
 0x200   :  { %378 = shalt.err (!%p375_p8)
}
 0x201   :  { %s379_s15 = scalar_lea.hbm %s504_s4, 16 }
 0x202   :  { %p380_p9 = scmp.ne.s32.totalorder %s504_s4, %s379_s15  ;;  %p383_p10 = scmp.lt.u32.totalorder %s379_s15, %s504_s4 }
 0x204   :  { %p385_p11 = pnand %p383_p10, %p380_p9 }
 0x206   :  { %388 = shalt.err (!%p385_p11)
}
 0x207   :  { %225 = dma.vmem_to_hbm [thread:$0]  %s223_s11, 16, %s504_s4, [#allocation4]  }
 0x208   :  { %395 = dma.done.wait [#allocation4], 16  }
 0x209   :  { %396 = vsyncadd [#allocation4], 4294967280 }
 0x20a   :  { %229 = vsyncpa [#allocation3], 1 }
 0x20b   :  { %230 = vsyncpa [#allocation6], 1 }
 0x20c   :  { %231 = vsyncpa [#allocation9], 1 }
 0x20d   :  { %232 = vsyncpa [#allocation4], 1 }

</bundles_post_ra>
